<compile_context>
chip_gen: v6e
topology: v6e:2x2x1
jax: 0.10.0
libtpu: 0.0.40
codegen_flags: <defaults>
</compile_context>

<pallas_src>
import jax
import jax.numpy as jnp
import numpy as np
from jax.experimental import pallas as pl
from jax.experimental.pallas import tpu as pltpu

# ----- constants from TwoRobots.__init__ / TwoRobots.f -----
N_AGENTS = 2
N_STATE = 8           # self.n
N_INPUT = 4           # self.m
H = 0.05              # self.h
K_SPRING = 2.0        # kspringGround (k1 = k2); masses are 1 and fold away
C_DAMP = 2.0          # cdampGround   (c1 = c2)

# Kernel row layout: [p1x, p1y, p2x, p2y, v1x, v1y, v2x, v2y]   (positions; velocities)
# Module row layout: [p1x, p1y, v1x, v1y, p2x, p2y, v2x, v2y]
# _PERM is an involution mapping module <-> kernel row order.
_PERM = np.array([0, 1, 4, 5, 2, 3, 6, 7])


def _rollout_kernel(x0_ref, cx_ref, csw_ref, cb_ref, u_ref, w_ref, traj_ref, state_ref):
    """One Euler step on a full (8, LANE_BLOCK) tile; state carried in VMEM scratch."""
    t = pl.program_id(1)

    @pl.when(t == 0)
    def _():
        state_ref[...] = x0_ref[...]          # (re)load this batch block's initial state

    x = state_ref[...]                        # (8, LB) f32, rows = [pos; vel]
    xsw = pltpu.roll(x, shift=4, axis=0)      # rows = [vel; pos]  (sublane roll, XLU slot)
    x_next = (cx_ref[...] * x + csw_ref[...] * xsw + cb_ref[...]
              + H * u_ref[0] + w_ref[0])      # pure full-tile VPU adds/muls
    state_ref[...] = x_next
    traj_ref[0] = x_next                      # lane-dense, unmasked store


def _pick_lane_block(batch):
    for cand in (512, 256, 128):
        if batch % cand == 0:
            return cand
    raise ValueError(f"batch ({batch}) must be a multiple of 128")


@jax.jit
def two_robots_rollout(x0, u_seq, w_seq, xbar):
    """Fused T-step Euler rollout of B independent trajectories (one pallas_call).

    x0:    (8, B)     initial states, module component order, batch on the last (lane) axis
    u_seq: (T, 4, B)  controls per step
    w_seq: (T, 8, B)  additive noise per step, module component order
    xbar:  (8,)       target state (module buffer), shared across the batch
    returns (T, 8, B) trajectory x_1..x_T in module component order
    """
    f32 = jnp.float32
    T, _, B = w_seq.shape
    lb = _pick_lane_block(B)
    nb = B // lb

    # Row permutation to the kernel's [positions; velocities] layout.
    x0_k = x0.astype(f32)[_PERM, :]
    w_k = w_seq.astype(f32)[:, _PERM, :]
    # Controls act on the velocity rows (kernel rows 4..7) in their natural order.
    # TODO(synk): for very long rollouts, have the caller provide u already padded to
    # 8 rows (or fold h*B@u into w) to skip this single wrapper-side pad pass.
    u_k = jnp.concatenate([jnp.zeros((T, 4, B), f32), u_seq.astype(f32)], axis=1)

    # Per-row Euler coefficients, resident in VMEM (computed once per call):
    #   x_next = cx * x + csw * roll(x, 4) + cbias + h * u + w
    # which reproduces both the position rows (dp/dt = v) and velocity rows
    # (dv/dt = -K*(p - pbar) - C*v + u) with no iota / compare / select in the kernel.
    xb = xbar.astype(f32)
    cx_vec = jnp.concatenate([jnp.ones((4,), f32),
                              jnp.full((4,), 1.0 - H * C_DAMP, f32)])
    csw_vec = jnp.concatenate([jnp.full((4,), H, f32),
                               jnp.full((4,), -H * K_SPRING, f32)])
    cb_vec = jnp.concatenate([jnp.zeros((4,), f32),
                              H * K_SPRING * xb[np.array([0, 1, 4, 5])]])
    cx = jnp.broadcast_to(cx_vec[:, None], (N_STATE, B))
    csw = jnp.broadcast_to(csw_vec[:, None], (N_STATE, B))
    cb = jnp.broadcast_to(cb_vec[:, None], (N_STATE, B))

    const_spec = pl.BlockSpec((N_STATE, lb), lambda b, t: (0, b))      # resident per batch block
    step_spec = pl.BlockSpec((1, N_STATE, lb), lambda b, t: (t, 0, b))  # streamed per step

    traj_k = pl.pallas_call(
        _rollout_kernel,
        out_shape=jax.ShapeDtypeStruct((T, N_STATE, B), f32),
        grid=(nb, T),                                   # batch blocks outer, time inner
        in_specs=[
            const_spec,                                 # x0
            const_spec, const_spec, const_spec,         # cx, csw, cbias
            step_spec,                                  # u (padded to 8 rows)
            step_spec,                                  # w
        ],
        out_specs=step_spec,                            # trajectory, lane-dense blocks
        scratch_shapes=[pltpu.VMEM((N_STATE, lb), f32)],
        compiler_params=pltpu.CompilerParams(
            dimension_semantics=("parallel", "arbitrary")),  # v7x: split batch blocks across TCs
    )(x0_k, cx, csw, cb, u_k, w_k)

    return traj_k[:, _PERM, :]                          # back to module row order


def two_robots_forward(t, x, u, w, xbar):
    """Exact equivalent of TwoRobots.forward(t, x, u, w) for one flat 8-state sample.

    Per the perf review a single 40-float step is launch-overhead bound in any custom
    kernel; this path replicates the sample across one 128-wide lane block and reuses
    the fused rollout kernel with T = 1 so the Pallas path stays exercised.
    """
    del t  # unused, exactly as in the PyTorch module
    f32 = jnp.float32
    lb = 128
    x0 = jnp.broadcast_to(x.astype(f32)[:, None], (N_STATE, lb))
    u_seq = jnp.broadcast_to(u.astype(f32)[None, :, None], (1, N_INPUT, lb))
    w_seq = jnp.broadcast_to(w.astype(f32)[None, :, None], (1, N_STATE, lb))
    traj = two_robots_rollout(x0, u_seq, w_seq, xbar)
    return traj[0, :, 0]


# ----------------------------- NumPy reference (validation) -----------------------------
def _reference_step(x, u, w, xbar):
    """Float64 transcription of the original torch math (sqrt/atan2 path, unsimplified)."""
    x = np.asarray(x, np.float64); u = np.asarray(u, np.float64)
    w = np.asarray(w, np.float64); xbar = np.asarray(xbar, np.float64)
    px, py = x[[0, 4]], x[[1, 5]]
    vx, vy = x[[2, 6]], x[[3, 7]]
    xt, yt = xbar[[0, 4]], xbar[[1, 5]]
    dxt, dyt = px - xt, py - yt
    projxt, projyt = np.cos(np.arctan2(dyt, dxt)), np.sin(np.arctan2(dyt, dxt))
    projvxt, projvyt = np.cos(np.arctan2(vy, vx)), np.sin(np.arctan2(vy, vx))
    Fc = C_DAMP * np.sqrt(vx ** 2 + vy ** 2)
    Fk = K_SPRING * np.sqrt(dxt ** 2 + dyt ** 2)
    Fgx = -Fk * projxt - Fc * projvxt
    Fgy = -Fk * projyt - Fc * projvyt
    A1x = np.array([0.0, 0.0, Fgx[0], Fgy[0], 0.0, 0.0, Fgx[1], Fgy[1]])
    A2x = np.array([x[2], x[3], 0.0, 0.0, x[6], x[7], 0.0, 0.0])
    Bu = np.array([0.0, 0.0, u[0], u[1], 0.0, 0.0, u[2], u[3]])
    return x + (A1x + A2x + Bu) * H + w


def _reference_rollout(x0, u_seq, w_seq, xbar):
    T = u_seq.shape[0]
    x = np.asarray(x0, np.float64)
    traj = np.zeros((T, N_STATE), np.float64)
    for step in range(T):
        x = _reference_step(x, u_seq[step], w_seq[step], xbar)
        traj[step] = x
    return traj


if __name__ == "__main__":
    key = jax.random.PRNGKey(0)
    kx, ku, kw, kb = jax.random.split(key, 4)
    T, B = 16, 256  # small demo: 16 fused Euler steps, 256 trajectories on the lane axis

    x0 = jax.random.normal(kx, (N_STATE, B), dtype=jnp.float32)
    u_seq = jax.random.normal(ku, (T, N_INPUT, B), dtype=jnp.float32)
    w_seq = 0.01 * jax.random.normal(kw, (T, N_STATE, B), dtype=jnp.float32)
    xbar = jax.random.normal(kb, (N_STATE,), dtype=jnp.float32)

    traj = two_robots_rollout(x0, u_seq, w_seq, xbar)
    traj = jax.block_until_ready(traj)

    # Validate a few batch columns of the fused rollout against the original torch math.
    x0_np, u_np, w_np, xb_np = map(np.asarray, (x0, u_seq, w_seq, xbar))
    traj_np = np.asarray(traj)
    for col in (0, 1, B // 2, B - 1):
        ref = _reference_rollout(x0_np[:, col], u_np[:, :, col], w_np[:, :, col], xb_np)
        np.testing.assert_allclose(traj_np[:, :, col], ref, rtol=1e-4, atol=1e-4)

    # Validate the single-step, module-signature forward path as well.
    out1 = jax.block_until_ready(
        two_robots_forward(0.0, x0[:, 0], u_seq[0, :, 0], w_seq[0, :, 0], xbar))
    ref1 = _reference_step(x0_np[:, 0], u_np[0, :, 0], w_np[0, :, 0], xb_np)
    np.testing.assert_allclose(np.asarray(out1), ref1, rtol=1e-4, atol=1e-4)

    print("KERNEL_OK")
</pallas_src>

<mosaic_0001>
module attributes {stable_mosaic.version = 11 : i64} {
  func.func @_rollout_kernel(%arg0: i32, %arg1: i32, %arg2: memref<8x256xf32, #tpu.memory_space<vmem>>, %arg3: memref<8x256xf32, #tpu.memory_space<vmem>>, %arg4: memref<8x256xf32, #tpu.memory_space<vmem>>, %arg5: memref<8x256xf32, #tpu.memory_space<vmem>>, %arg6: memref<1x8x256xf32, #tpu.memory_space<vmem>>, %arg7: memref<1x8x256xf32, #tpu.memory_space<vmem>>, %arg8: memref<1x8x256xf32, #tpu.memory_space<vmem>>, %arg9: memref<8x256xf32, #tpu.memory_space<vmem>>) attributes {dimension_semantics = [#tpu.dimension_semantics<parallel>, #tpu.dimension_semantics<arbitrary>], iteration_bounds = array<i64: 1, 16>, scalar_prefetch = 0 : i64, scratch_operands = 1 : i64, tpu.core_type = #tpu.core_type<tc>, window_params = [{transform_indices = @transform_0, window_bounds = array<i64: 8, 256>}, {transform_indices = @transform_1, window_bounds = array<i64: 8, 256>}, {transform_indices = @transform_2, window_bounds = array<i64: 8, 256>}, {transform_indices = @transform_3, window_bounds = array<i64: 8, 256>}, {transform_indices = @transform_4, window_bounds = array<i64: 1, 8, 256>}, {transform_indices = @transform_5, window_bounds = array<i64: 1, 8, 256>}, {transform_indices = @transform_6, window_bounds = array<i64: 1, 8, 256>}]} {
    %c0_i32 = arith.constant 0 : i32
    %0 = arith.cmpi eq, %arg1, %c0_i32 : i32
    %1 = arith.extui %0 : i1 to i32
    %c0_i32_0 = arith.constant 0 : i32
    %2 = arith.cmpi ne, %1, %c0_i32_0 : i32
    scf.if %2 {
      %c0_19 = arith.constant 0 : index
      %c0_20 = arith.constant 0 : index
      %24 = vector.load %arg2[%c0_19, %c0_20] : memref<8x256xf32, #tpu.memory_space<vmem>>, vector<8x256xf32>
      %c0_21 = arith.constant 0 : index
      %c0_22 = arith.constant 0 : index
      %25 = vector.load %arg9[%c0_21, %c0_22] : memref<8x256xf32, #tpu.memory_space<vmem>>, vector<8x256xf32>
      tpu.vector_store %arg9[%c0_21, %c0_22], %24 {strides = array<i32>} : memref<8x256xf32, #tpu.memory_space<vmem>>, vector<8x256xf32>,
    } else {
    }
    %c0 = arith.constant 0 : index
    %c0_1 = arith.constant 0 : index
    %3 = vector.load %arg9[%c0, %c0_1] : memref<8x256xf32, #tpu.memory_space<vmem>>, vector<8x256xf32>
    %c4_i32 = arith.constant 4 : i32
    %4 = tpu.dynamic_rotate %3 by %c4_i32 dim 0 : vector<8x256xf32>, i32 -> vector<8x256xf32>
    %c0_2 = arith.constant 0 : index
    %c0_3 = arith.constant 0 : index
    %5 = vector.load %arg3[%c0_2, %c0_3] : memref<8x256xf32, #tpu.memory_space<vmem>>, vector<8x256xf32>
    %6 = arith.mulf %5, %3 : vector<8x256xf32>
    %c0_4 = arith.constant 0 : index
    %c0_5 = arith.constant 0 : index
    %7 = vector.load %arg4[%c0_4, %c0_5] : memref<8x256xf32, #tpu.memory_space<vmem>>, vector<8x256xf32>
    %8 = arith.mulf %7, %4 : vector<8x256xf32>
    %9 = arith.addf %6, %8 : vector<8x256xf32>
    %c0_6 = arith.constant 0 : index
    %c0_7 = arith.constant 0 : index
    %10 = vector.load %arg5[%c0_6, %c0_7] : memref<8x256xf32, #tpu.memory_space<vmem>>, vector<8x256xf32>
    %11 = arith.addf %9, %10 : vector<8x256xf32>
    %c0_8 = arith.constant 0 : index
    %c0_9 = arith.constant 0 : index
    %c0_10 = arith.constant 0 : index
    %12 = vector.load %arg6[%c0_8, %c0_9, %c0_10] : memref<1x8x256xf32, #tpu.memory_space<vmem>>, vector<1x8x256xf32>
    %13 = vector.shape_cast %12 : vector<1x8x256xf32> to vector<8x256xf32>
    %cst = arith.constant 5.000000e-02 : f32
    %14 = vector.broadcast %cst : f32 to vector<8x256xf32>
    %15 = arith.mulf %14, %13 : vector<8x256xf32>
    %16 = arith.addf %11, %15 : vector<8x256xf32>
    %c0_11 = arith.constant 0 : index
    %c0_12 = arith.constant 0 : index
    %c0_13 = arith.constant 0 : index
    %17 = vector.load %arg7[%c0_11, %c0_12, %c0_13] : memref<1x8x256xf32, #tpu.memory_space<vmem>>, vector<1x8x256xf32>
    %18 = vector.shape_cast %17 : vector<1x8x256xf32> to vector<8x256xf32>
    %19 = arith.addf %16, %18 : vector<8x256xf32>
    %c0_14 = arith.constant 0 : index
    %c0_15 = arith.constant 0 : index
    %20 = vector.load %arg9[%c0_14, %c0_15] : memref<8x256xf32, #tpu.memory_space<vmem>>, vector<8x256xf32>
    tpu.vector_store %arg9[%c0_14, %c0_15], %19 {strides = array<i32>} : memref<8x256xf32, #tpu.memory_space<vmem>>, vector<8x256xf32>,
    %c0_16 = arith.constant 0 : index
    %c0_17 = arith.constant 0 : index
    %c0_18 = arith.constant 0 : index
    %21 = vector.load %arg8[%c0_16, %c0_17, %c0_18] : memref<1x8x256xf32, #tpu.memory_space<vmem>>, vector<1x8x256xf32>
    %22 = vector.shape_cast %21 : vector<1x8x256xf32> to vector<8x256xf32>
    %23 = vector.shape_cast %19 : vector<8x256xf32> to vector<1x8x256xf32>
    tpu.vector_store %arg8[%c0_16, %c0_17, %c0_18], %23 {strides = array<i32>} : memref<1x8x256xf32, #tpu.memory_space<vmem>>, vector<1x8x256xf32>,
    return
  }
  func.func @transform_0(%arg0: i32, %arg1: i32) -> (i32, i32) {
    %c0_i32 = arith.constant 0 : i32
    %c0_i32_0 = arith.constant 0 : i32
    return %c0_i32, %arg0 : i32, i32
  }
  func.func @transform_1(%arg0: i32, %arg1: i32) -> (i32, i32) {
    %c0_i32 = arith.constant 0 : i32
    %c0_i32_0 = arith.constant 0 : i32
    return %c0_i32, %arg0 : i32, i32
  }
  func.func @transform_2(%arg0: i32, %arg1: i32) -> (i32, i32) {
    %c0_i32 = arith.constant 0 : i32
    %c0_i32_0 = arith.constant 0 : i32
    return %c0_i32, %arg0 : i32, i32
  }
  func.func @transform_3(%arg0: i32, %arg1: i32) -> (i32, i32) {
    %c0_i32 = arith.constant 0 : i32
    %c0_i32_0 = arith.constant 0 : i32
    return %c0_i32, %arg0 : i32, i32
  }
  func.func @transform_4(%arg0: i32, %arg1: i32) -> (i32, i32, i32) {
    %c0_i32 = arith.constant 0 : i32
    %c0_i32_0 = arith.constant 0 : i32
    return %arg1, %c0_i32, %arg0 : i32, i32, i32
  }
  func.func @transform_5(%arg0: i32, %arg1: i32) -> (i32, i32, i32) {
    %c0_i32 = arith.constant 0 : i32
    %c0_i32_0 = arith.constant 0 : i32
    return %arg1, %c0_i32, %arg0 : i32, i32, i32
  }
  func.func @transform_6(%arg0: i32, %arg1: i32) -> (i32, i32, i32) {
    %c0_i32 = arith.constant 0 : i32
    %c0_i32_0 = arith.constant 0 : i32
    return %arg1, %c0_i32, %arg0 : i32, i32, i32
  }
}

</mosaic_0001>

<bundles_post_ra>
// kernel: two_robots_rollout.1
= control target key start
LH: loop header
LB: loop body
LE: loop exit
PB: predicated region body
PF: predicated region fallthrough
CT: control target
= control target key end

     0   :  { %s724_s21 = smov 0   ;;  %s726_s22 = smov 0   ;;  %s792_s0 = inlined_call_operand.vmem [shape: f32[8,256], index: 0, kind: input, shape index: {}]   ;;  %s793_s1 = inlined_call_operand.vmem [shape: f32[8,256], index: 1, kind: input, shape index: {}]   ;;  %s794_s2 = inlined_call_operand.vmem [shape: f32[8,256], index: 2, kind: input, shape index: {}]   ;;  %s795_s3 = inlined_call_operand.vmem [shape: f32[8,256], index: 3, kind: input, shape index: {}]   ;;  %s796_s4 = inlined_call_operand.vmem [shape: f32[16,8,256], index: 4, kind: input, shape index: {}]   ;;  %s797_s5 = inlined_call_operand.vmem [shape: f32[16,8,256], index: 5, kind: input, shape index: {}]   ;;  %s798_s6 = inlined_call_operand.vmem [shape: f32[16,8,256], index: 6, kind: output, shape index: {}]  }
   0x1   :  { %s728_s23 = smov 0  }
   0x2 LB: > { %s25_s24 = sadd.s32 1, %s683_s22  ;;  %p628_p0 = scmp.ge.s32.totalorder %s687_s23, 1  ;;  %s687_s23 = sphi %s728_s23, %s16_s23   ;;  %s683_s22 = sphi %s726_s22, %s800_s22   ;;  %s679_s21 = sphi %s724_s21, %s799_s21  }
   0x3   : > { %p26_p1 = scmp.ge.s32.totalorder %s25_s24, 16  ;;  %p294_p2 = scmp.lt.s32.totalorder %s687_s23, 17 }
   0x5   : > { %s802_s24 = smov (%p26_p1, %s25_s24), 0  ;;  %p295_p3 = pnand %p628_p0, %p294_p2 }
   0x6   : > { %p386_p4 = scmp.lt.s32.totalorder (!%p295_p3), %s679_s21, 15  ;;  %p635_p5 = scmp.ne.s32.totalorder (!%p295_p3), %s679_s21, 0 }
   0x7   : > { %298 = sbr.rel (%p295_p3) target bundleno = 41 (0x29), region = 44 }
   0xc   : > { %s387_s25 = scalar_select %p386_p4, %s679_s21, 15 }
   0xd   : > { %418 = sbr.rel (%p635_p5) target bundleno = 20 (0x14), region = 48 }
   0xe   : > { %s638_s26 = sshll.u32 %s387_s25, 4 }
   0xf   : > { %s393_s29 = scalar_lea.vmem %s796_s4, %s638_s26  ;;  %s748_s8 = scalar_lea.vmem %s797_s5, %s638_s26 }
  0x10   : > { %s753_s11 = scalar_lea.vmem %s798_s6, %s638_s26 }
  0x12   : > { %v419_v0 = vld [vmem:[%s792_s0] sm:$0xff]  ;;  %v420_v1 = vld [vmem:[%s792_s0 + $0x8] sm:$0xff] }
  0x13   : > { %421 = vst [vmem:[#allocation2] sm:$0xff] %v419_v0  ;;  %422 = vst [vmem:[#allocation2 + $0x8] sm:$0xff] %v420_v1 }
  0x14 PF: > { %v427_v3 = vld [vmem:[%s793_s1] sm:$0xff]  ;;  %v428_v9 = vld [vmem:[%s793_s1 + $0x8] sm:$0xff] }
  0x15   : > { %v431_v4 = vld [vmem:[%s794_s2] sm:$0xff]  ;;  %v432_v10 = vld [vmem:[%s794_s2 + $0x8] sm:$0xff] }
  0x16   : > { %v441_v7 = vld [vmem:[%s393_s29] sm:$0xff]  ;;  %v442_v15 = vld [vmem:[%s393_s29 + $0x8] sm:$0xff] }
  0x17   : > { %v437_v14 = vld [vmem:[%s795_s3] sm:$0xff]  ;;  %v443_v17 = vmul.f32 0.05, %v441_v7  ;;  %v438_v19 = vld [vmem:[%s795_s3 + $0x8] sm:$0xff]  ;;  %v444_v22 = vmul.f32 0.05, %v442_v15 }
  0x18   : > { %v447_v23 = vld [vmem:[%s748_s8] sm:$0xff]  ;;  %v448_v26 = vld [vmem:[%s748_s8 + $0x8] sm:$0xff] }
  0x1a   : > { %v423_v2 = vld [vmem:[#allocation2] sm:$0xff]  ;;  %v424_v8 = vld [vmem:[#allocation2 + $0x8] sm:$0xff] }
  0x1b   : > { %v425_v5 = vrot.slane %v423_v2, 4  ;;  %v429_v6 = vmul.f32 %v427_v3, %v423_v2  ;;  %v426_v12 = vrot.slane %v424_v8, 4  ;;  %v430_v13 = vmul.f32 %v428_v9, %v424_v8 }
  0x1d   : > { %v433_v11 = vmul.f32 %v431_v4, %v425_v5  ;;  %v434_v18 = vmul.f32 %v432_v10, %v426_v12 }
  0x1f   : > { %v435_v16 = vadd.f32 %v433_v11, %v429_v6  ;;  %v436_v21 = vadd.f32 %v434_v18, %v430_v13 }
  0x21   : > { %v439_v20 = vadd.f32 %v437_v14, %v435_v16  ;;  %v440_v25 = vadd.f32 %v438_v19, %v436_v21 }
  0x23   : > { %v445_v24 = vadd.f32 %v443_v17, %v439_v20  ;;  %v446_v28 = vadd.f32 %v444_v22, %v440_v25 }
  0x25   : > { %v449_v27 = vadd.f32 %v447_v23, %v445_v24  ;;  %v450_v29 = vadd.f32 %v448_v26, %v446_v28 }
  0x27   : > { %451 = vst [vmem:[#allocation2] sm:$0xff] %v449_v27  ;;  %453 = vst [vmem:[%s753_s11] sm:$0xff] %v449_v27 }
  0x28   : > { %452 = vst [vmem:[#allocation2 + $0x8] sm:$0xff] %v450_v29  ;;  %454 = vst [vmem:[%s753_s11 + $0x8] sm:$0xff] %v450_v29 }
  0x29 PF: > { %s16_s23 = sadd.s32 1, %s687_s23   ;;  %s799_s21 = smov %s683_s22 }
  0x2a   : > { %p13_p6 = scmp.ge.s32.totalorder %s16_s23, 18   ;;  %s800_s22 = smov %s802_s24 }
  0x2c   :  { %15 = sbr.rel (!%p13_p6) target bundleno = 2 (0x2), region = 93 }

</bundles_post_ra>
